<compile_context>
chip_gen: v7x
topology: tpu7x:2x2x1
jax: 0.10.0
libtpu: 0.0.40
codegen_flags: <defaults>
</compile_context>

<pallas_src>
import functools

import jax
import jax.numpy as jnp
from jax.experimental import pallas as pl
from jax.experimental.pallas import tpu as pltpu


def _round_up(x, m):
    return ((x + m - 1) // m) * m


def _unit2mel_kernel(x_ref, w_ref, b_ref, o_ref):
    # x_ref: (1, tT, Kp)   w_ref: (Kp, Hp)   b_ref: (1, Hp)   o_ref: (1, tT, Hp)
    y = jnp.dot(x_ref[0], w_ref[...], preferred_element_type=jnp.float32)
    o_ref[0] = (y + b_ref[...]).astype(o_ref.dtype)


def _vmem_limit_bytes(tT, K, H, in_bytes, out_bytes):
    # Double-buffered x/out tiles + resident (double-buffered) weights/bias,
    # plus slack for the f32 accumulator and compiler temporaries.
    io = 2 * (tT * K * in_bytes + tT * H * out_bytes)
    w = 2 * (K * H * in_bytes + H * 4)
    acc = tT * H * 4
    total = int(1.5 * (io + w + acc)) + (4 << 20)
    return max(8 << 20, min(total, 48 << 20))   # fits v7x's 64 MiB VMEM


def init_unit2mel_params(key, input_channel, n_hidden, use_pitch_aug=False,
                         dtype=jnp.float32):
    """Deterministic synthetic parameters (nn.Linear shapes, stored as (in, out))."""
    ks = jax.random.split(key, 7)
    scale_u = 1.0 / jnp.sqrt(jnp.asarray(input_channel, jnp.float32))
    params = {
        "w_unit": (jax.random.uniform(ks[0], (input_channel, n_hidden),
                                      minval=-1., maxval=1.) * scale_u).astype(dtype),
        "b_unit": (jax.random.uniform(ks[1], (1, n_hidden),
                                      minval=-1., maxval=1.) * scale_u).astype(dtype),
        "w_f0":   jax.random.uniform(ks[2], (1, n_hidden),
                                     minval=-1., maxval=1.).astype(dtype),
        "b_f0":   jax.random.uniform(ks[3], (1, n_hidden),
                                     minval=-1., maxval=1.).astype(dtype),
        "w_vol":  jax.random.uniform(ks[4], (1, n_hidden),
                                     minval=-1., maxval=1.).astype(dtype),
        "b_vol":  jax.random.uniform(ks[5], (1, n_hidden),
                                     minval=-1., maxval=1.).astype(dtype),
    }
    if use_pitch_aug:
        params["w_aug"] = jax.random.uniform(ks[6], (1, n_hidden),
                                             minval=-1., maxval=1.).astype(dtype)
    return params


@functools.partial(jax.jit,
                   static_argnames=("use_pitch_aug", "block_t", "compute_dtype"))
def unit2mel_forward(params, units, f0, volume, reference_audio_mel,
                     aug_shift=None, use_pitch_aug=False, block_t=256,
                     compute_dtype=None):
    """Unit2Mel.forward embedding front-end.

    units: (B, T, I); f0, volume, aug_shift: (B, T, 1).
    Returns (B, T, n_hidden).
    """
    B, T, I = units.shape
    H = params["w_unit"].shape[1]
    cdt = jnp.dtype(compute_dtype) if compute_dtype is not None else units.dtype

    # --- Fold the rank-1 embeds into one matmul -------------------------------
    feats = [units.astype(cdt),
             jnp.log1p(f0 / 700.0).astype(cdt),
             volume.astype(cdt)]
    w_rows = [params["w_unit"], params["w_f0"], params["w_vol"]]
    if use_pitch_aug and aug_shift is not None:
        feats.append((aug_shift / 5.0).astype(cdt))
        w_rows.append(params["w_aug"])
    x_aug = jnp.concatenate(feats, axis=-1)                       # (B, T, K)
    K = x_aug.shape[-1]

    w_all = jnp.concatenate(w_rows, axis=0).astype(cdt)           # (K, H)
    b_all = (params["b_unit"].astype(jnp.float32)
             + params["b_f0"].astype(jnp.float32)
             + params["b_vol"].astype(jnp.float32))               # (1, H) f32

    # --- Pad for TPU layout ---------------------------------------------------
    H_pad = _round_up(H, 128)                 # lane-dense output (unmasked vst)
    K_pad = _round_up(K, 8)                   # sublane-aligned contraction dim
    tT = min(block_t, _round_up(T, 8))        # sequence tile
    T_pad = _round_up(T, tT)

    x_aug = jnp.pad(x_aug, ((0, 0), (0, T_pad - T), (0, K_pad - K)))
    w_all = jnp.pad(w_all, ((0, K_pad - K), (0, H_pad - H)))
    b_all = jnp.pad(b_all, ((0, 0), (0, H_pad - H)))

    in_bytes = jnp.dtype(cdt).itemsize
    out_bytes = jnp.dtype(cdt).itemsize

    out = pl.pallas_call(
        _unit2mel_kernel,
        out_shape=jax.ShapeDtypeStruct((B, T_pad, H_pad), cdt),
        grid_spec=pltpu.PrefetchScalarGridSpec(
            num_scalar_prefetch=0,
            grid=(B, T_pad // tT),
            in_specs=[
                pl.BlockSpec((1, tT, K_pad), lambda b, t: (b, t, 0)),
                pl.BlockSpec((K_pad, H_pad), lambda b, t: (0, 0)),   # resident
                pl.BlockSpec((1, H_pad), lambda b, t: (0, 0)),       # resident
            ],
            out_specs=pl.BlockSpec((1, tT, H_pad), lambda b, t: (b, t, 0)),
        ),
        compiler_params=pltpu.CompilerParams(
            dimension_semantics=("parallel", "parallel"),
            vmem_limit_bytes=_vmem_limit_bytes(tT, K_pad, H_pad,
                                               in_bytes, out_bytes)),
    )(x_aug, w_all, b_all)

    # TODO(synk): MRTE(x, reference_audio_mel) and the GaussianDiffusion decoder
    # are external (undefined in the provided source); treated as identity.
    del reference_audio_mel
    return out[:, :T, :H]


def _reference_forward(params, units, f0, volume, aug_shift=None,
                       use_pitch_aug=False):
    """Pure-JAX (f32) reference for correctness checking."""
    x = jnp.einsum("bti,ih->bth", units, params["w_unit"]) + params["b_unit"][0]
    x = x + (jnp.log1p(f0 / 700.0) * params["w_f0"][0] + params["b_f0"][0])
    x = x + (volume * params["w_vol"][0] + params["b_vol"][0])
    if use_pitch_aug and aug_shift is not None:
        x = x + (aug_shift / 5.0) * params["w_aug"][0]
    return x


if __name__ == "__main__":
    # Small shapes consistent with the module's forward.
    B, T, T_ref = 2, 40, 8       # T=40 with block_t=16 exercises T-tiling + padding
    input_channel = 32           # "units" feature dim
    n_hidden = 64                # padded to 128 lanes inside the wrapper
    out_dims = 32                # reference mel channels
    block_t = 16

    key = jax.random.PRNGKey(0)
    kp, ku, kf, kv, kr, ka = jax.random.split(key, 6)

    units = jax.random.normal(ku, (B, T, input_channel), jnp.float32)
    f0 = jnp.abs(jax.random.normal(kf, (B, T, 1), jnp.float32)) * 200.0 + 50.0
    volume = jax.random.uniform(kv, (B, T, 1), jnp.float32)
    aug_shift = jax.random.normal(ka, (B, T, 1), jnp.float32)
    reference_audio_mel = jax.random.normal(kr, (B, T_ref, out_dims), jnp.float32)

    # --- no-aug, f32 ---
    params = init_unit2mel_params(kp, input_channel, n_hidden, use_pitch_aug=False)
    out = unit2mel_forward(params, units, f0, volume, reference_audio_mel,
                           aug_shift=None, use_pitch_aug=False, block_t=block_t)
    out = jax.block_until_ready(out)
    ref = _reference_forward(params, units, f0, volume)
    assert out.shape == (B, T, n_hidden), out.shape
    assert jnp.allclose(out, ref, atol=1e-4, rtol=1e-4), "mismatch (no-aug, f32)"

    # --- with pitch-aug, f32 ---
    params_a = init_unit2mel_params(kp, input_channel, n_hidden, use_pitch_aug=True)
    out_a = unit2mel_forward(params_a, units, f0, volume, reference_audio_mel,
                             aug_shift=aug_shift, use_pitch_aug=True,
                             block_t=block_t)
    out_a = jax.block_until_ready(out_a)
    ref_a = _reference_forward(params_a, units, f0, volume, aug_shift,
                               use_pitch_aug=True)
    assert jnp.allclose(out_a, ref_a, atol=1e-4, rtol=1e-4), "mismatch (aug, f32)"

    # --- bf16 compute path (memory-bound v6e/v7x optimization), loose check ---
    out_bf = unit2mel_forward(params, units, f0, volume, reference_audio_mel,
                              aug_shift=None, use_pitch_aug=False,
                              block_t=block_t, compute_dtype=jnp.bfloat16)
    out_bf = jax.block_until_ready(out_bf)
    assert out_bf.shape == (B, T, n_hidden)
    assert jnp.max(jnp.abs(out_bf.astype(jnp.float32) - ref)) < 0.1, \
        "mismatch (bf16 path)"

    print("KERNEL_OK")
</pallas_src>

<mosaic_0001>
module attributes {stable_mosaic.version = 11 : i64} {
  func.func @_unit2mel_kernel(%arg0: i32, %arg1: i32, %arg2: memref<1x16x40xf32, #tpu.memory_space<vmem>>, %arg3: memref<40x128xf32, #tpu.memory_space<vmem>>, %arg4: memref<1x128xf32, #tpu.memory_space<vmem>>, %arg5: memref<1x16x128xf32, #tpu.memory_space<vmem>>) attributes {dimension_semantics = [#tpu.dimension_semantics<parallel>, #tpu.dimension_semantics<parallel>], iteration_bounds = array<i64: 2, 3>, scalar_prefetch = 0 : i64, scratch_operands = 0 : i64, tpu.core_type = #tpu.core_type<tc>, window_params = [{transform_indices = @transform_0, window_bounds = array<i64: 1, 16, 40>}, {pipeline_mode = #tpu.pipeline_mode<synchronous>, transform_indices = @transform_1, window_bounds = array<i64: 40, 128>}, {pipeline_mode = #tpu.pipeline_mode<synchronous>, transform_indices = @transform_2, window_bounds = array<i64: 1, 128>}, {transform_indices = @transform_3, window_bounds = array<i64: 1, 16, 128>}]} {
    %c0 = arith.constant 0 : index
    %c0_0 = arith.constant 0 : index
    %c0_1 = arith.constant 0 : index
    %0 = vector.load %arg2[%c0, %c0_0, %c0_1] : memref<1x16x40xf32, #tpu.memory_space<vmem>>, vector<1x16x40xf32>
    %1 = vector.shape_cast %0 : vector<1x16x40xf32> to vector<16x40xf32>
    %c0_2 = arith.constant 0 : index
    %c0_3 = arith.constant 0 : index
    %2 = vector.load %arg3[%c0_2, %c0_3] : memref<40x128xf32, #tpu.memory_space<vmem>>, vector<40x128xf32>
    %cst = arith.constant dense<0.000000e+00> : vector<16x128xf32>
    %3 = tpu.matmul %1, %2, %cst {dimension_numbers = #tpu.dot_dimension_numbers<[1], [0], [0], [1], [0, 0, 1, 1], [], []>} : vector<16x40xf32>, vector<40x128xf32>, vector<16x128xf32> -> vector<16x128xf32>
    %c0_4 = arith.constant 0 : index
    %c0_5 = arith.constant 0 : index
    %4 = vector.load %arg4[%c0_4, %c0_5] : memref<1x128xf32, #tpu.memory_space<vmem>>, vector<1x128xf32>
    %5 = vector.broadcast %4 : vector<1x128xf32> to vector<16x128xf32>
    %6 = arith.addf %3, %5 : vector<16x128xf32>
    %c0_6 = arith.constant 0 : index
    %c0_7 = arith.constant 0 : index
    %c0_8 = arith.constant 0 : index
    %7 = vector.load %arg5[%c0_6, %c0_7, %c0_8] : memref<1x16x128xf32, #tpu.memory_space<vmem>>, vector<1x16x128xf32>
    %8 = vector.shape_cast %7 : vector<1x16x128xf32> to vector<16x128xf32>
    %9 = vector.shape_cast %6 : vector<16x128xf32> to vector<1x16x128xf32>
    tpu.vector_store %arg5[%c0_6, %c0_7, %c0_8], %9 {strides = array<i32>} : memref<1x16x128xf32, #tpu.memory_space<vmem>>, vector<1x16x128xf32>,
    return
  }
  func.func @transform_0(%arg0: i32, %arg1: i32) -> (i32, i32, i32) {
    %c0_i32 = arith.constant 0 : i32
    %c0_i32_0 = arith.constant 0 : i32
    return %arg0, %arg1, %c0_i32 : i32, i32, i32
  }
  func.func @transform_1(%arg0: i32, %arg1: i32) -> (i32, i32) {
    %c0_i32 = arith.constant 0 : i32
    %c0_i32_0 = arith.constant 0 : i32
    %c0_i32_1 = arith.constant 0 : i32
    return %c0_i32, %c0_i32_0 : i32, i32
  }
  func.func @transform_2(%arg0: i32, %arg1: i32) -> (i32, i32) {
    %c0_i32 = arith.constant 0 : i32
    %c0_i32_0 = arith.constant 0 : i32
    %c0_i32_1 = arith.constant 0 : i32
    return %c0_i32, %c0_i32_0 : i32, i32
  }
  func.func @transform_3(%arg0: i32, %arg1: i32) -> (i32, i32, i32) {
    %c0_i32 = arith.constant 0 : i32
    %c0_i32_0 = arith.constant 0 : i32
    return %arg0, %arg1, %c0_i32 : i32, i32, i32
  }
}

</mosaic_0001>

<bundles_post_ra>
// kernel: unit2mel_forward.1
= control target key start
LH: loop header
LB: loop body
LE: loop exit
PB: predicated region body
PF: predicated region fallthrough
CT: control target
= control target key end

     0   :  { %s541_s12 = smov 0   ;;  %s543_s13 = smov 0   ;;  %s610_s0 = inlined_call_operand.vmem [shape: f32[2,48,40], index: 0, kind: input, shape index: {}]   ;;  %s611_s1 = inlined_call_operand.vmem [shape: f32[40,128], index: 1, kind: input, shape index: {}]   ;;  %s612_s2 = inlined_call_operand.vmem [shape: f32[1,128], index: 2, kind: input, shape index: {}]   ;;  %s613_s3 = inlined_call_operand.vmem [shape: f32[2,48,128], index: 3, kind: output, shape index: {}]  }
   0x1   :  { %s545_s14 = smov 0   ;;  %s547_s15 = smov 0  }
   0x2   :  { %s549_s16 = smov 0  }
   0x3 LB: > { %s22_s17 = sadd.s32 1, %s511_s14  ;;  %s25_s18 = sadd.s32 1, %s515_s15  ;;  %s519_s16 = sphi %s549_s16, %s13_s16   ;;  %s515_s15 = sphi %s547_s15, %s617_s15   ;;  %s511_s14 = sphi %s545_s14, %s616_s14   ;;  %s507_s13 = sphi %s543_s13, %s615_s13   ;;  %s503_s12 = sphi %s541_s12, %s614_s12  }
   0x4   : > { %p23_p0 = scmp.ge.s32.totalorder %s22_s17, 3  ;;  %p402_p1 = scmp.ge.s32.totalorder %s519_s16, 1 }
   0x5   : > { %p158_p2 = scmp.lt.s32.totalorder %s519_s16, 7 }
   0x6   : > { %s619_s17 = smov (%p23_p0, %s22_s17), 0  ;;  %s621_s18 = smov (!%p23_p0, %s25_s18), %s515_s15 }
   0x7   : > { %p159_p3 = pnand %p402_p1, %p158_p2  ;;  %p27_p4 = scmp.ge.s32.totalorder %s621_s18, 2 }
   0x8   : > { %v212_v0 = vld [vmem:[%s611_s1] sm:$0xff] (!%p159_p3)  ;;  %v213_v1 = vld [vmem:[%s611_s1 + $0x8] sm:$0xff] (!%p159_p3)  ;;  %v214_v2 = vld [vmem:[%s611_s1 + $0x10] sm:$0xff] (!%p159_p3)  ;;  %s403_s25 = sshll.u32 (!%p159_p3), %s503_s12, 1  ;;  %p191_p5 = scmp.lt.s32.totalorder (!%p159_p3), %s507_s13, 1  ;;  %vm224_vm0 = vcmask (!%p159_p3), 326656  }
   0x9   : > { %s623_s18 = smov (%p27_p4, %s621_s18), 0  ;;  %162 = sbr.rel (%p159_p3) target bundleno = 240 (0xf0), region = 32 }
   0xa   : > { %v432_v3 = vpack.c.bf16 (!%p159_p3), %v213_v1, %v212_v0  ;;  %v215_v4 = vld [vmem:[%s611_s1 + $0x18] sm:$0xff] (!%p159_p3)  ;;  %p193_p6 = scmp.lt.s32.totalorder (!%p159_p3), %s403_s25, 5  ;;  %v216_v6 = vld [vmem:[%s611_s1 + $0x20] sm:$0xff] (!%p159_p3) }
   0xb   : > { %v436_v5 = vpack.c.bf16 (!%p159_p3), %v215_v4, %v214_v2  ;;  %v407_v9 = vld [vmem:[%s612_s2] ss:$0 sm:$0xff] (!%p159_p3) }
   0xc   : > { %433 = vmatprep.subr.bf16.mxu0 (!%p159_p3), %v432_v3 }
   0xd   : > { %435 = vmatpush3.bf16.msra.mxu0 (!%p159_p3), %v432_v3 }
   0xe   : > { %437 = vmatprep.subr.bf16.mxu0 (!%p159_p3), %v436_v5 }
  0x10   : > { %s625_s13 = smov (!%p191_p5, %s507_s13), 1  ;;  %s627_s25 = smov (!%p193_p6, %s403_s25), 5 }
  0x11   : > { %s440_s28 = smul.u32 6, %s625_s13  ;;  %439 = vmatpush3.bf16.msra.mxu0 %v436_v5 }
  0x12   : > { %427 = vmatprep.subr.mxu0 %v216_v6 }
  0x13   : > { %s196_s4 = sadd.s32 %s440_s28, %s627_s25 }
  0x14   : > { %s404_s5 = sshll.u32 %s196_s4, 3 }
  0x15   : > { %s198_s8 = scalar_lea.vmem %s610_s0, %s404_s5  ;;  %428 = vmatpush3.msra.mxu0 %v216_v6  ;;  %s208_s13 = scalar_lea.vmem %s613_s3, %s404_s5 }
  0x16   : > { %v210_v7 = vld [vmem:[%s198_s8] sm:$0xff]  ;;  %v211_v8 = vld [vmem:[%s198_s8 + $0x8] sm:$0xff] }
  0x17   : > { %429 = vmatprep.mubr.msk.f32.mxu0 %vm224_vm0, %v210_v7 }
  0x18   : > { %430 = vmatmul.mubr.msk.f32.vlgmr.msra.gmra.mrb[0].mxu0 %vm224_vm0, %v211_v8 }
  0xeb   : > { %v431_v10 = vpop.f32.mrb[0].mxu0 }
  0xec   : > { %v303_v11 = vadd.f32 %v431_v10, %v407_v9  ;;  %v297_v12 = vpop.f32.mrb[1].mxu0 }
  0xed   : > { %v298_v13 = vadd.f32 %v407_v9, %v297_v12 }
  0xee   : > { %307 = vst [vmem:[%s208_s13 + $0x8] sm:$0xff] %v303_v11 }
  0xef   : > { %306 = vst [vmem:[%s208_s13] sm:$0xff] %v298_v13 }
  0xf0 PF: > { %s13_s16 = sadd.s32 1, %s519_s16   ;;  %s614_s12 = smov %s511_s14 }
  0xf1   : > { %p10_p7 = scmp.ge.s32.totalorder %s13_s16, 8   ;;  %s615_s13 = smov %s515_s15 }
  0xf2   : > { %s616_s14 = smov %s619_s17  ;;  %s617_s15 = smov %s623_s18 }
  0xf3   :  { %12 = sbr.rel (!%p10_p7) target bundleno = 3 (0x3), region = 62 }

</bundles_post_ra>
